<compile_context>
chip_gen: v7x
topology: tpu7x:2x2x1
jax: 0.10.0
libtpu: 0.0.40
codegen_flags: <defaults>
</compile_context>

<pallas_src>
import math
import functools

import jax
import jax.numpy as jnp
import numpy as np
from jax.experimental import pallas as pl
from jax.experimental.pallas import tpu as pltpu


def _performer_kernel(x_ref, gamma_ref, beta_ref, wqkv_ref, bqkv_ref, wprm_ref,
                      projw_ref, projb_ref, o_ref,
                      kptv_acc, qp_buf, v_buf,
                      *, in_dim, m_feat, ts, s_actual, needs_mask, epsilon, fast_recip):
    p = pl.program_id(1)          # 0: accumulate pass, 1: output pass
    s = pl.program_id(2)          # sequence-tile index
    cdt = wqkv_ref.dtype          # MXU operand dtype (bf16 or f32)
    inv_sqrt_m = 1.0 / math.sqrt(m_feat)

    @pl.when(jnp.logical_and(p == 0, s == 0))
    def _init():
        kptv_acc[...] = jnp.zeros_like(kptv_acc)

    @pl.when(p == 0)
    def _pass1_accumulate():
        # ----- LayerNorm(dim), f32 -----
        x = x_ref[...]                                        # (ts, dim)
        mu = jnp.mean(x, axis=-1, keepdims=True)
        xc = x - mu
        var = jnp.mean(xc * xc, axis=-1, keepdims=True)
        xn = xc * jax.lax.rsqrt(var + 1e-5) * gamma_ref[...] + beta_ref[...]

        # ----- fused q|k|v projection: one (ts, dim) x (dim, 3*in_dim) matmul -----
        qkv = jnp.dot(xn.astype(cdt), wqkv_ref[...],
                      preferred_element_type=jnp.float32) + bqkv_ref[...]
        q = qkv[:, :in_dim]
        k = qkv[:, in_dim:2 * in_dim]
        v = qkv[:, 2 * in_dim:]

        # ----- fused prm_exp for q and k (stacked along sublanes) -----
        qk = jnp.concatenate([q, k], axis=0)                  # (2*ts, in_dim) f32
        xd = 0.5 * jnp.sum(qk * qk, axis=-1, keepdims=True)   # (2*ts, 1)
        wtx = jnp.dot(qk.astype(cdt), wprm_ref[...],
                      preferred_element_type=jnp.float32)     # (2*ts, m)
        prm = jnp.exp(wtx - xd) * inv_sqrt_m                  # f32, EUP exp
        qp = prm[:ts]
        kp = prm[ts:]

        if needs_mask:  # zero padded rows so they do not pollute kptv / kp_sum
            row = s * ts + jax.lax.broadcasted_iota(jnp.int32, (ts, 1), 0)
            kp = jnp.where(row < s_actual, kp, 0.0)

        # ----- kptv_aug += kp^T @ [v | 1]  (last column accumulates kp_sum) -----
        v_aug = jnp.concatenate([v, jnp.ones((ts, 1), jnp.float32)], axis=1)
        kptv_acc[...] += jax.lax.dot_general(
            kp.astype(cdt), v_aug.astype(cdt),
            (((0,), (0,)), ((), ())), preferred_element_type=jnp.float32)

        # stash q-side features and v for the output pass
        qp_buf[s] = qp.astype(qp_buf.dtype)
        v_buf[s] = v
        o_ref[...] = jnp.zeros_like(o_ref)   # deterministic placeholder (overwritten)

    @pl.when(p == 1)
    def _pass2_output():
        qp = qp_buf[s].astype(cdt)                            # (ts, m)
        v = v_buf[s]                                          # (ts, in_dim) f32
        y_aug = jnp.dot(qp, kptv_acc[...].astype(cdt),
                        preferred_element_type=jnp.float32)   # (ts, in_dim+1)
        y = y_aug[:, :in_dim]
        d = y_aug[:, in_dim:] + epsilon                       # D = qp @ kp_sum
        if fast_recip:
            y = y * pl.reciprocal(d, approx=True)             # EUP, off the VALU path
        else:
            y = y / d
        y = jnp.dot(y.astype(cdt), projw_ref[...],
                    preferred_element_type=jnp.float32) + projb_ref[...]
        o_ref[...] = (v + y).astype(o_ref.dtype)


def performer_attention(x, params, *, epsilon=1e-8, mxu_dtype=jnp.bfloat16, seq_tile=256):
    B, S, dim = x.shape
    in_dim = params["wq"].shape[1]
    m = params["wprm"].shape[1]

    # Fuse QKV weights/biases wrapper-side; cast MXU-resident weights to the MXU dtype.
    wqkv = jnp.concatenate([params["wq"], params["wk"], params["wv"]], axis=1).astype(mxu_dtype)
    bqkv = jnp.concatenate([params["bq"], params["bk"], params["bv"]], axis=1)
    wprm = params["wprm"].astype(mxu_dtype)
    projw = params["projw"].astype(mxu_dtype)
    projb = params["projb"]

    # Sequence tiling (two-pass: accumulate, then emit).
    ts = S if S <= seq_tile else seq_tile
    n_s = (S + ts - 1) // ts
    s_pad = n_s * ts
    needs_mask = (s_pad != S)
    x_in = jnp.pad(x, ((0, 0), (0, s_pad - S), (0, 0))) if needs_mask else x

    fast_recip = jnp.dtype(mxu_dtype) != jnp.dtype(jnp.float32)

    kernel = functools.partial(
        _performer_kernel, in_dim=in_dim, m_feat=m, ts=ts, s_actual=S,
        needs_mask=needs_mask, epsilon=epsilon, fast_recip=fast_recip)

    def _const(shape):
        return pl.BlockSpec(shape, lambda b, p, s, _z=(0,) * len(shape): _z)

    in_specs = [
        # x tile; during the output pass (p==1) the index collapses to tile 0 so the
        # same block is not re-fetched n_s times (x is not read in pass 1).
        pl.BlockSpec((None, ts, dim), lambda b, p, s: (b, s * (1 - p), 0)),
        _const((1, dim)),            # gamma
        _const((1, dim)),            # beta
        _const((dim, 3 * in_dim)),   # fused wq|wk|wv
        _const((1, 3 * in_dim)),     # fused bq|bk|bv
        _const((dim, m)),            # wprm (transposed performer features)
        _const((in_dim, in_dim)),    # proj weight
        _const((1, in_dim)),         # proj bias
    ]
    # Output: accumulate pass collapses to tile 0 (never written back with real data
    # before pass 1 revisits it), output pass walks the tiles — lane-dense per-tile stores.
    out_specs = pl.BlockSpec((None, ts, in_dim), lambda b, p, s: (b, s * p, 0))

    scratch_shapes = [
        pltpu.VMEM((m, in_dim + 1), jnp.float32),    # kptv_aug accumulator (+ kp_sum col)
        pltpu.VMEM((n_s, ts, m), mxu_dtype),         # qp stash for pass 2
        pltpu.VMEM((n_s, ts, in_dim), jnp.float32),  # v stash (f32 for exact residual)
    ]

    flops = 2 * B * s_pad * (dim * 3 * in_dim        # fused QKV
                             + 2 * in_dim * m        # prm_exp (q & k stacked)
                             + 2 * m * (in_dim + 1)  # kptv_aug + y_aug
                             + in_dim * in_dim)      # proj
    transcendentals = B * s_pad * (2 * m + 2)        # exp for q&k features, rsqrt, recip
    weight_arrays = (wqkv, bqkv, wprm, projw, projb, params["gamma"], params["beta"])
    bytes_accessed = int(x_in.size * x_in.dtype.itemsize
                         + B * s_pad * in_dim * 4
                         + sum(int(w.size) * w.dtype.itemsize for w in weight_arrays))

    out = pl.pallas_call(
        kernel,
        out_shape=jax.ShapeDtypeStruct((B, s_pad, in_dim), jnp.float32),
        grid_spec=pltpu.PrefetchScalarGridSpec(
            num_scalar_prefetch=0,
            grid=(B, 2, n_s),
            in_specs=in_specs,
            out_specs=out_specs,
            scratch_shapes=scratch_shapes,
        ),
        compiler_params=pltpu.CompilerParams(
            dimension_semantics=("parallel", "arbitrary", "arbitrary")),
        cost_estimate=pl.CostEstimate(flops=int(flops),
                                      transcendentals=int(transcendentals),
                                      bytes_accessed=bytes_accessed),
    )(x_in, params["gamma"], params["beta"], wqkv, bqkv, wprm, projw, projb)

    return out[:, :S] if needs_mask else out


def make_params(key, dim, in_dim, kernel_ratio=0.5):
    """Deterministic synthetic parameters matching the PyTorch module's shapes."""
    m = int(in_dim * kernel_ratio)
    keys = jax.random.split(key, 10)
    std = 0.02
    # orthogonal random-feature matrix (rows orthonormal, scaled by sqrt(m)),
    # stored transposed as (in_dim, m)
    a = jax.random.normal(keys[0], (in_dim, m), jnp.float32)
    q_mat, _ = jnp.linalg.qr(a)                      # orthonormal columns
    wprm = q_mat * math.sqrt(m)                      # == (orthogonal(m,in_dim)*sqrt(m)).T
    return {
        "gamma": jnp.ones((1, dim), jnp.float32),
        "beta": jnp.zeros((1, dim), jnp.float32),
        "wq": std * jax.random.normal(keys[1], (dim, in_dim), jnp.float32),
        "bq": std * jax.random.normal(keys[2], (1, in_dim), jnp.float32),
        "wk": std * jax.random.normal(keys[3], (dim, in_dim), jnp.float32),
        "bk": std * jax.random.normal(keys[4], (1, in_dim), jnp.float32),
        "wv": std * jax.random.normal(keys[5], (dim, in_dim), jnp.float32),
        "bv": std * jax.random.normal(keys[6], (1, in_dim), jnp.float32),
        "wprm": wprm.astype(jnp.float32),
        "projw": std * jax.random.normal(keys[7], (in_dim, in_dim), jnp.float32),
        "projb": std * jax.random.normal(keys[8], (1, in_dim), jnp.float32),
    }


def performer_attention_ref(x, params, *, epsilon=1e-8):
    """Pure-JAX reference (eval-mode dropout) used only for verification."""
    mu = jnp.mean(x, axis=-1, keepdims=True)
    var = jnp.mean((x - mu) ** 2, axis=-1, keepdims=True)
    xn = (x - mu) / jnp.sqrt(var + 1e-5) * params["gamma"][0] + params["beta"][0]
    q = xn @ params["wq"] + params["bq"][0]
    k = xn @ params["wk"] + params["bk"][0]
    v = xn @ params["wv"] + params["bv"][0]
    m = params["wprm"].shape[1]

    def prm_exp(t):
        td = 0.5 * jnp.sum(t * t, axis=-1, keepdims=True)
        wtx = jnp.einsum("bse,em->bsm", t, params["wprm"])
        return jnp.exp(wtx - td) / math.sqrt(m)

    kp, qp = prm_exp(k), prm_exp(q)
    D = jnp.einsum("bsm,bm->bs", qp, kp.sum(axis=1))[..., None]
    kptv = jnp.einsum("bse,bsm->bem", v, kp)
    y = jnp.einsum("bsm,bem->bse", qp, kptv) / (D + epsilon)
    return v + (y @ params["projw"] + params["projb"][0])


if __name__ == "__main__":
    key = jax.random.PRNGKey(0)
    kx, kparam, kx2 = jax.random.split(key, 3)

    B, S, dim = 2, 8, 32
    in_dim = dim                                 # module default: in_dim = dim
    params = make_params(kparam, dim, in_dim)

    # 1) exact f32 MXU path, single sequence tile -> tight check vs reference
    x = jax.random.normal(kx, (B, S, dim), jnp.float32)
    out_f32 = jax.block_until_ready(performer_attention(x, params, mxu_dtype=jnp.float32))
    ref = performer_attention_ref(x, params)
    np.testing.assert_allclose(np.asarray(out_f32), np.asarray(ref), rtol=2e-5, atol=2e-5)

    # 2) bf16 MXU path with sequence tiling (multi-tile + masked tail)
    S2 = 320
    x2 = jax.random.normal(kx2, (B, S2, dim), jnp.float32)
    out_bf16 = jax.block_until_ready(
        performer_attention(x2, params, mxu_dtype=jnp.bfloat16, seq_tile=256))
    ref2 = performer_attention_ref(x2, params)
    np.testing.assert_allclose(np.asarray(out_bf16), np.asarray(ref2), rtol=2e-2, atol=2e-2)

    print("KERNEL_OK")
</pallas_src>

<mosaic_0001>
module attributes {stable_mosaic.version = 11 : i64} {
  func.func @_performer_kernel(%arg0: i32, %arg1: i32, %arg2: i32, %arg3: memref<1x8x32xf32, #tpu.memory_space<vmem>>, %arg4: memref<1x32xf32, #tpu.memory_space<vmem>>, %arg5: memref<1x32xf32, #tpu.memory_space<vmem>>, %arg6: memref<32x96xf32, #tpu.memory_space<vmem>>, %arg7: memref<1x96xf32, #tpu.memory_space<vmem>>, %arg8: memref<32x16xf32, #tpu.memory_space<vmem>>, %arg9: memref<32x32xf32, #tpu.memory_space<vmem>>, %arg10: memref<1x32xf32, #tpu.memory_space<vmem>>, %arg11: memref<1x8x32xf32, #tpu.memory_space<vmem>>, %arg12: memref<16x33xf32, #tpu.memory_space<vmem>>, %arg13: memref<1x8x16xf32, #tpu.memory_space<vmem>>, %arg14: memref<1x8x32xf32, #tpu.memory_space<vmem>>) attributes {dimension_semantics = [#tpu.dimension_semantics<parallel>, #tpu.dimension_semantics<arbitrary>, #tpu.dimension_semantics<arbitrary>], iteration_bounds = array<i64: 2, 2, 1>, scalar_prefetch = 0 : i64, scratch_operands = 3 : i64, tpu.core_type = #tpu.core_type<tc>, window_params = [{transform_indices = @transform_0, window_bounds = array<i64: 1, 8, 32>}, {pipeline_mode = #tpu.pipeline_mode<synchronous>, transform_indices = @transform_1, window_bounds = array<i64: 1, 32>}, {pipeline_mode = #tpu.pipeline_mode<synchronous>, transform_indices = @transform_2, window_bounds = array<i64: 1, 32>}, {pipeline_mode = #tpu.pipeline_mode<synchronous>, transform_indices = @transform_3, window_bounds = array<i64: 32, 96>}, {pipeline_mode = #tpu.pipeline_mode<synchronous>, transform_indices = @transform_4, window_bounds = array<i64: 1, 96>}, {pipeline_mode = #tpu.pipeline_mode<synchronous>, transform_indices = @transform_5, window_bounds = array<i64: 32, 16>}, {pipeline_mode = #tpu.pipeline_mode<synchronous>, transform_indices = @transform_6, window_bounds = array<i64: 32, 32>}, {pipeline_mode = #tpu.pipeline_mode<synchronous>, transform_indices = @transform_7, window_bounds = array<i64: 1, 32>}, {transform_indices = @transform_8, window_bounds = array<i64: 1, 8, 32>}]} {
    %c0_i32 = arith.constant 0 : i32
    %0 = arith.cmpi eq, %arg1, %c0_i32 : i32
    %c0_i32_0 = arith.constant 0 : i32
    %1 = arith.cmpi eq, %arg2, %c0_i32_0 : i32
    %2 = arith.andi %0, %1 : i1
    %3 = arith.extui %2 : i1 to i32
    %c0_i32_1 = arith.constant 0 : i32
    %4 = arith.cmpi ne, %3, %c0_i32_1 : i32
    scf.if %4 {
      %cst = arith.constant 0.000000e+00 : f32
      %11 = vector.broadcast %cst : f32 to vector<16x33xf32>
      %c0 = arith.constant 0 : index
      %c0_5 = arith.constant 0 : index
      %12 = vector.load %arg12[%c0, %c0_5] : memref<16x33xf32, #tpu.memory_space<vmem>>, vector<16x33xf32>
      tpu.vector_store %arg12[%c0, %c0_5], %11 {strides = array<i32>} : memref<16x33xf32, #tpu.memory_space<vmem>>, vector<16x33xf32>,
    } else {
    }
    %c0_i32_2 = arith.constant 0 : i32
    %5 = arith.cmpi eq, %arg1, %c0_i32_2 : i32
    %6 = arith.extui %5 : i1 to i32
    %c0_i32_3 = arith.constant 0 : i32
    %7 = arith.cmpi ne, %6, %c0_i32_3 : i32
    scf.if %7 {
      %c0 = arith.constant 0 : index
      %c0_5 = arith.constant 0 : index
      %c0_6 = arith.constant 0 : index
      %11 = vector.load %arg3[%c0, %c0_5, %c0_6] : memref<1x8x32xf32, #tpu.memory_space<vmem>>, vector<1x8x32xf32>
      %12 = vector.shape_cast %11 : vector<1x8x32xf32> to vector<8x32xf32>
      %cst = arith.constant dense<0.000000e+00> : vector<8xf32>
      %13 = vector.multi_reduction <add>, %12, %cst [1] : vector<8x32xf32> to vector<8xf32>
      %14 = vector.shape_cast %13 : vector<8xf32> to vector<8x1xf32>
      %cst_7 = arith.constant 3.200000e+01 : f32
      %15 = vector.broadcast %cst_7 : f32 to vector<8x1xf32>
      %16 = arith.divf %14, %15 : vector<8x1xf32>
      %17 = vector.broadcast %16 : vector<8x1xf32> to vector<8x32xf32>
      %18 = arith.subf %12, %17 : vector<8x32xf32>
      %19 = arith.mulf %18, %18 : vector<8x32xf32>
      %cst_8 = arith.constant dense<0.000000e+00> : vector<8xf32>
      %20 = vector.multi_reduction <add>, %19, %cst_8 [1] : vector<8x32xf32> to vector<8xf32>
      %21 = vector.shape_cast %20 : vector<8xf32> to vector<8x1xf32>
      %cst_9 = arith.constant 3.200000e+01 : f32
      %22 = vector.broadcast %cst_9 : f32 to vector<8x1xf32>
      %23 = arith.divf %21, %22 : vector<8x1xf32>
      %cst_10 = arith.constant 9.99999974E-6 : f32
      %24 = vector.broadcast %cst_10 : f32 to vector<8x1xf32>
      %25 = arith.addf %23, %24 : vector<8x1xf32>
      %26 = math.rsqrt %25 : vector<8x1xf32>
      %27 = vector.broadcast %26 : vector<8x1xf32> to vector<8x32xf32>
      %28 = arith.mulf %18, %27 : vector<8x32xf32>
      %c0_11 = arith.constant 0 : index
      %c0_12 = arith.constant 0 : index
      %29 = vector.load %arg4[%c0_11, %c0_12] : memref<1x32xf32, #tpu.memory_space<vmem>>, vector<1x32xf32>
      %30 = vector.broadcast %29 : vector<1x32xf32> to vector<8x32xf32>
      %31 = arith.mulf %28, %30 : vector<8x32xf32>
      %c0_13 = arith.constant 0 : index
      %c0_14 = arith.constant 0 : index
      %32 = vector.load %arg5[%c0_13, %c0_14] : memref<1x32xf32, #tpu.memory_space<vmem>>, vector<1x32xf32>
      %33 = vector.broadcast %32 : vector<1x32xf32> to vector<8x32xf32>
      %34 = arith.addf %31, %33 : vector<8x32xf32>
      %c0_15 = arith.constant 0 : index
      %c0_16 = arith.constant 0 : index
      %35 = vector.load %arg6[%c0_15, %c0_16] : memref<32x96xf32, #tpu.memory_space<vmem>>, vector<32x96xf32>
      %cst_17 = arith.constant dense<0.000000e+00> : vector<8x96xf32>
      %36 = tpu.matmul %34, %35, %cst_17 {dimension_numbers = #tpu.dot_dimension_numbers<[1], [0], [0], [1], [0, 0, 1, 1], [], []>} : vector<8x32xf32>, vector<32x96xf32>, vector<8x96xf32> -> vector<8x96xf32>
      %c0_18 = arith.constant 0 : index
      %c0_19 = arith.constant 0 : index
      %37 = vector.load %arg7[%c0_18, %c0_19] : memref<1x96xf32, #tpu.memory_space<vmem>>, vector<1x96xf32>
      %38 = vector.broadcast %37 : vector<1x96xf32> to vector<8x96xf32>
      %39 = arith.addf %36, %38 : vector<8x96xf32>
      %40 = vector.extract_strided_slice %39 {offsets = [0, 0], sizes = [8, 32], strides = [1, 1]} : vector<8x96xf32> to vector<8x32xf32>
      %41 = vector.extract_strided_slice %39 {offsets = [0, 32], sizes = [8, 32], strides = [1, 1]} : vector<8x96xf32> to vector<8x32xf32>
      %42 = vector.extract_strided_slice %39 {offsets = [0, 64], sizes = [8, 32], strides = [1, 1]} : vector<8x96xf32> to vector<8x32xf32>
      %43 = tpu.concatenate %40, %41 in 0 : vector<8x32xf32>, vector<8x32xf32> -> vector<16x32xf32>
      %44 = arith.mulf %43, %43 : vector<16x32xf32>
      %cst_20 = arith.constant dense<0.000000e+00> : vector<16xf32>
      %45 = vector.multi_reduction <add>, %44, %cst_20 [1] : vector<16x32xf32> to vector<16xf32>
      %46 = vector.shape_cast %45 : vector<16xf32> to vector<16x1xf32>
      %cst_21 = arith.constant 5.000000e-01 : f32
      %47 = vector.broadcast %cst_21 : f32 to vector<16x1xf32>
      %48 = arith.mulf %47, %46 : vector<16x1xf32>
      %c0_22 = arith.constant 0 : index
      %c0_23 = arith.constant 0 : index
      %49 = vector.load %arg8[%c0_22, %c0_23] : memref<32x16xf32, #tpu.memory_space<vmem>>, vector<32x16xf32>
      %cst_24 = arith.constant dense<0.000000e+00> : vector<16x16xf32>
      %50 = tpu.matmul %43, %49, %cst_24 {dimension_numbers = #tpu.dot_dimension_numbers<[1], [0], [0], [1], [0, 0, 1, 1], [], []>} : vector<16x32xf32>, vector<32x16xf32>, vector<16x16xf32> -> vector<16x16xf32>
      %51 = vector.broadcast %48 : vector<16x1xf32> to vector<16x16xf32>
      %52 = arith.subf %50, %51 : vector<16x16xf32>
      %53 = math.exp %52 : vector<16x16xf32>
      %cst_25 = arith.constant 2.500000e-01 : f32
      %54 = vector.broadcast %cst_25 : f32 to vector<16x16xf32>
      %55 = arith.mulf %53, %54 : vector<16x16xf32>
      %56 = vector.extract_strided_slice %55 {offsets = [0, 0], sizes = [8, 16], strides = [1, 1]} : vector<16x16xf32> to vector<8x16xf32>
      %57 = vector.extract_strided_slice %55 {offsets = [8, 0], sizes = [8, 16], strides = [1, 1]} : vector<16x16xf32> to vector<8x16xf32>
      %cst_26 = arith.constant 1.000000e+00 : f32
      %58 = vector.broadcast %cst_26 : f32 to vector<8x1xf32>
      %59 = tpu.concatenate %42, %58 in 1 : vector<8x32xf32>, vector<8x1xf32> -> vector<8x33xf32>
      %c0_27 = arith.constant 0 : index
      %c0_28 = arith.constant 0 : index
      %60 = vector.load %arg12[%c0_27, %c0_28] : memref<16x33xf32, #tpu.memory_space<vmem>>, vector<16x33xf32>
      %cst_29 = arith.constant dense<0.000000e+00> : vector<16x33xf32>
      %61 = tpu.matmul %57, %59, %cst_29 {dimension_numbers = #tpu.dot_dimension_numbers<[0], [0], [1], [1], [0, 1, 1, 1], [], []>} : vector<8x16xf32>, vector<8x33xf32>, vector<16x33xf32> -> vector<16x33xf32>
      %62 = arith.addf %60, %61 : vector<16x33xf32>
      %c0_30 = arith.constant 0 : index
      %c0_31 = arith.constant 0 : index
      %63 = vector.load %arg12[%c0_30, %c0_31] : memref<16x33xf32, #tpu.memory_space<vmem>>, vector<16x33xf32>
      tpu.vector_store %arg12[%c0_30, %c0_31], %62 {strides = array<i32>} : memref<16x33xf32, #tpu.memory_space<vmem>>, vector<16x33xf32>,
      %64 = arith.index_cast %arg2 : i32 to index
      %c0_32 = arith.constant 0 : index
      %c0_33 = arith.constant 0 : index
      %65 = vector.load %arg13[%64, %c0_32, %c0_33] : memref<1x8x16xf32, #tpu.memory_space<vmem>>, vector<1x8x16xf32>
      %66 = vector.shape_cast %65 : vector<1x8x16xf32> to vector<8x16xf32>
      %67 = vector.shape_cast %56 : vector<8x16xf32> to vector<1x8x16xf32>
      tpu.vector_store %arg13[%64, %c0_32, %c0_33], %67 {strides = array<i32>} : memref<1x8x16xf32, #tpu.memory_space<vmem>>, vector<1x8x16xf32>,
      %68 = arith.index_cast %arg2 : i32 to index
      %c0_34 = arith.constant 0 : index
      %c0_35 = arith.constant 0 : index
      %69 = vector.load %arg14[%68, %c0_34, %c0_35] : memref<1x8x32xf32, #tpu.memory_space<vmem>>, vector<1x8x32xf32>
      %70 = vector.shape_cast %69 : vector<1x8x32xf32> to vector<8x32xf32>
      %71 = vector.shape_cast %42 : vector<8x32xf32> to vector<1x8x32xf32>
      tpu.vector_store %arg14[%68, %c0_34, %c0_35], %71 {strides = array<i32>} : memref<1x8x32xf32, #tpu.memory_space<vmem>>, vector<1x8x32xf32>,
      %cst_36 = arith.constant 0.000000e+00 : f32
      %72 = vector.broadcast %cst_36 : f32 to vector<8x32xf32>
      %c0_37 = arith.constant 0 : index
      %c0_38 = arith.constant 0 : index
      %c0_39 = arith.constant 0 : index
      %73 = vector.load %arg11[%c0_37, %c0_38, %c0_39] : memref<1x8x32xf32, #tpu.memory_space<vmem>>, vector<1x8x32xf32>
      %74 = vector.shape_cast %73 : vector<1x8x32xf32> to vector<8x32xf32>
      %75 = vector.shape_cast %72 : vector<8x32xf32> to vector<1x8x32xf32>
      tpu.vector_store %arg11[%c0_37, %c0_38, %c0_39], %75 {strides = array<i32>} : memref<1x8x32xf32, #tpu.memory_space<vmem>>, vector<1x8x32xf32>,
    } else {
    }
    %c1_i32 = arith.constant 1 : i32
    %8 = arith.cmpi eq, %arg1, %c1_i32 : i32
    %9 = arith.extui %8 : i1 to i32
    %c0_i32_4 = arith.constant 0 : i32
    %10 = arith.cmpi ne, %9, %c0_i32_4 : i32
    scf.if %10 {
      %11 = arith.index_cast %arg2 : i32 to index
      %c0 = arith.constant 0 : index
      %c0_5 = arith.constant 0 : index
      %12 = vector.load %arg13[%11, %c0, %c0_5] : memref<1x8x16xf32, #tpu.memory_space<vmem>>, vector<1x8x16xf32>
      %13 = vector.shape_cast %12 : vector<1x8x16xf32> to vector<8x16xf32>
      %14 = arith.index_cast %arg2 : i32 to index
      %c0_6 = arith.constant 0 : index
      %c0_7 = arith.constant 0 : index
      %15 = vector.load %arg14[%14, %c0_6, %c0_7] : memref<1x8x32xf32, #tpu.memory_space<vmem>>, vector<1x8x32xf32>
      %16 = vector.shape_cast %15 : vector<1x8x32xf32> to vector<8x32xf32>
      %c0_8 = arith.constant 0 : index
      %c0_9 = arith.constant 0 : index
      %17 = vector.load %arg12[%c0_8, %c0_9] : memref<16x33xf32, #tpu.memory_space<vmem>>, vector<16x33xf32>
      %cst = arith.constant dense<0.000000e+00> : vector<8x33xf32>
      %18 = tpu.matmul %13, %17, %cst {dimension_numbers = #tpu.dot_dimension_numbers<[1], [0], [0], [1], [0, 0, 1, 1], [], []>} : vector<8x16xf32>, vector<16x33xf32>, vector<8x33xf32> -> vector<8x33xf32>
      %19 = vector.extract_strided_slice %18 {offsets = [0, 0], sizes = [8, 32], strides = [1, 1]} : vector<8x33xf32> to vector<8x32xf32>
      %20 = vector.extract_strided_slice %18 {offsets = [0, 32], sizes = [8, 1], strides = [1, 1]} : vector<8x33xf32> to vector<8x1xf32>
      %cst_10 = arith.constant 9.99999993E-9 : f32
      %21 = vector.broadcast %cst_10 : f32 to vector<8x1xf32>
      %22 = arith.addf %20, %21 : vector<8x1xf32>
      %23 = vector.broadcast %22 : vector<8x1xf32> to vector<8x32xf32>
      %24 = arith.divf %19, %23 : vector<8x32xf32>
      %c0_11 = arith.constant 0 : index
      %c0_12 = arith.constant 0 : index
      %25 = vector.load %arg9[%c0_11, %c0_12] : memref<32x32xf32, #tpu.memory_space<vmem>>, vector<32x32xf32>
      %cst_13 = arith.constant dense<0.000000e+00> : vector<8x32xf32>
      %26 = tpu.matmul %24, %25, %cst_13 {dimension_numbers = #tpu.dot_dimension_numbers<[1], [0], [0], [1], [0, 0, 1, 1], [], []>} : vector<8x32xf32>, vector<32x32xf32>, vector<8x32xf32> -> vector<8x32xf32>
      %c0_14 = arith.constant 0 : index
      %c0_15 = arith.constant 0 : index
      %27 = vector.load %arg10[%c0_14, %c0_15] : memref<1x32xf32, #tpu.memory_space<vmem>>, vector<1x32xf32>
      %28 = vector.broadcast %27 : vector<1x32xf32> to vector<8x32xf32>
      %29 = arith.addf %26, %28 : vector<8x32xf32>
      %30 = arith.addf %16, %29 : vector<8x32xf32>
      %c0_16 = arith.constant 0 : index
      %c0_17 = arith.constant 0 : index
      %c0_18 = arith.constant 0 : index
      %31 = vector.load %arg11[%c0_16, %c0_17, %c0_18] : memref<1x8x32xf32, #tpu.memory_space<vmem>>, vector<1x8x32xf32>
      %32 = vector.shape_cast %31 : vector<1x8x32xf32> to vector<8x32xf32>
      %33 = vector.shape_cast %30 : vector<8x32xf32> to vector<1x8x32xf32>
      tpu.vector_store %arg11[%c0_16, %c0_17, %c0_18], %33 {strides = array<i32>} : memref<1x8x32xf32, #tpu.memory_space<vmem>>, vector<1x8x32xf32>,
    } else {
    }
    return
  }
  func.func @transform_0(%arg0: i32, %arg1: i32, %arg2: i32) -> (i32, i32, i32) {
    %c1_i32 = arith.constant 1 : i32
    %0 = arith.subi %c1_i32, %arg1 : i32
    %1 = arith.muli %arg2, %0 : i32
    %c0_i32 = arith.constant 0 : i32
    %c0_i32_0 = arith.constant 0 : i32
    return %arg0, %1, %c0_i32 : i32, i32, i32
  }
  func.func @transform_1(%arg0: i32, %arg1: i32, %arg2: i32) -> (i32, i32) {
    %c0_i32 = arith.constant 0 : i32
    %c0_i32_0 = arith.constant 0 : i32
    %c0_i32_1 = arith.constant 0 : i32
    return %c0_i32, %c0_i32_0 : i32, i32
  }
  func.func @transform_2(%arg0: i32, %arg1: i32, %arg2: i32) -> (i32, i32) {
    %c0_i32 = arith.constant 0 : i32
    %c0_i32_0 = arith.constant 0 : i32
    %c0_i32_1 = arith.constant 0 : i32
    return %c0_i32, %c0_i32_0 : i32, i32
  }
  func.func @transform_3(%arg0: i32, %arg1: i32, %arg2: i32) -> (i32, i32) {
    %c0_i32 = arith.constant 0 : i32
    %c0_i32_0 = arith.constant 0 : i32
    %c0_i32_1 = arith.constant 0 : i32
    return %c0_i32, %c0_i32_0 : i32, i32
  }
  func.func @transform_4(%arg0: i32, %arg1: i32, %arg2: i32) -> (i32, i32) {
    %c0_i32 = arith.constant 0 : i32
    %c0_i32_0 = arith.constant 0 : i32
    %c0_i32_1 = arith.constant 0 : i32
    return %c0_i32, %c0_i32_0 : i32, i32
  }
  func.func @transform_5(%arg0: i32, %arg1: i32, %arg2: i32) -> (i32, i32) {
    %c0_i32 = arith.constant 0 : i32
    %c0_i32_0 = arith.constant 0 : i32
    %c0_i32_1 = arith.constant 0 : i32
    return %c0_i32, %c0_i32_0 : i32, i32
  }
  func.func @transform_6(%arg0: i32, %arg1: i32, %arg2: i32) -> (i32, i32) {
    %c0_i32 = arith.constant 0 : i32
    %c0_i32_0 = arith.constant 0 : i32
    %c0_i32_1 = arith.constant 0 : i32
    return %c0_i32, %c0_i32_0 : i32, i32
  }
  func.func @transform_7(%arg0: i32, %arg1: i32, %arg2: i32) -> (i32, i32) {
    %c0_i32 = arith.constant 0 : i32
    %c0_i32_0 = arith.constant 0 : i32
    %c0_i32_1 = arith.constant 0 : i32
    return %c0_i32, %c0_i32_0 : i32, i32
  }
  func.func @transform_8(%arg0: i32, %arg1: i32, %arg2: i32) -> (i32, i32, i32) {
    %0 = arith.muli %arg2, %arg1 : i32
    %c0_i32 = arith.constant 0 : i32
    %c0_i32_0 = arith.constant 0 : i32
    return %arg0, %0, %c0_i32 : i32, i32, i32
  }
}

</mosaic_0001>

<bundles_post_ra>
// kernel: tpu_custom_call.1
= control target key start
LH: loop header
LB: loop body
LE: loop exit
PB: predicated region body
PF: predicated region fallthrough
CT: control target
= control target key end

     0   :  { %s1767_s0 = inlined_call_operand.hbm [shape: f32[2,8,32], index: 0, kind: input, shape index: {}]   ;;  %s1768_s1 = inlined_call_operand.vmem [shape: f32[1,32], index: 1, kind: input, shape index: {}]   ;;  %s1769_s2 = inlined_call_operand.vmem [shape: f32[1,32], index: 2, kind: input, shape index: {}]   ;;  %s1770_s3 = inlined_call_operand.vmem [shape: f32[32,96], index: 3, kind: input, shape index: {}]   ;;  %s1771_s4 = inlined_call_operand.hbm [shape: f32[1,96], index: 4, kind: input, shape index: {}]   ;;  %s1772_s5 = inlined_call_operand.vmem [shape: f32[32,16], index: 5, kind: input, shape index: {}]   ;;  %s1773_s6 = inlined_call_operand.vmem [shape: f32[32,32], index: 6, kind: input, shape index: {}]   ;;  %s1774_s7 = inlined_call_operand.vmem [shape: f32[1,32], index: 7, kind: input, shape index: {}]   ;;  %s1775_s8 = inlined_call_operand.hbm [shape: f32[2,8,32], index: 8, kind: output, shape index: {}]  }
   0x1   :  { %1783 = sst [smem:[#allocation18_spill]] %s1771_s4 }
   0x2   :  { %13 = vsyncpa [#allocation6], 0 }
   0x3   :  { %15 = vsyncpa [#allocation6 + $0x1], 0 }
   0x4   :  { %16 = vsyncpa [#allocation9], 0 }
   0x5   :  { %17 = vsyncpa [#allocation7], 0 }
   0x6   :  { %19 = vsyncpa [#allocation7 + $0x1], 0  ;;  %s1482_s27 = smov 0   ;;  %s1484_s28 = smov 0  }
   0x7   :  { %s1486_s29 = smov 0   ;;  %s1488_s30 = smov 0  }
   0x8   :  { %s1490_s9 = smov 0   ;;  %s1492_s10 = smov 0  }
   0x9   :  { %s1494_s11 = smov 0   ;;  %s1496_s12 = smov 0  }
   0xa LB: > { %1784 = sst [smem:[#allocation14_spill]] %s1394_s27  ;;  %s1034_s13 = sadd.s32 4294967295, %s1422_s12   ;;  %s1422_s12 = sphi %s1496_s12, %s25_s12   ;;  %s1418_s11 = sphi %s1494_s11, %s1812_s11   ;;  %s1414_s10 = sphi %s1492_s10, %s1811_s10   ;;  %s1410_s9 = sphi %s1490_s9, %s1810_s9   ;;  %s1406_s30 = sphi %s1488_s30, %s1809_s30   ;;  %s1402_s29 = sphi %s1486_s29, %s1808_s29   ;;  %s1398_s28 = sphi %s1484_s28, %s1807_s28   ;;  %s1394_s27 = sphi %s1482_s27, %s1806_s27  }
   0xb   : > { %s1035_s14 = sadd.s32 4294967294, %s1422_s12   ;;  %p70_p0 = scmp.ne.s32.totalorder %s1398_s28, %s1394_s27 }
   0xc   : > { %p1526_p1 = scmp.eq.s32.totalorder %s1034_s13, 0  ;;  %p1530_p2 = scmp.eq.s32.totalorder %s1034_s13, 3 }
   0xd   : > { %p251_p3 = scmp.eq.s32.totalorder %s1035_s14, 3  ;;  %p1036_p5 = scmp.ge.s32.totalorder %s1422_s12, 1 }
   0xe   : > { %s1785_s15 = scalar_select %p1526_p1, 1, 0 }
   0xf   : > { %s1786_s16 = scalar_select %p1530_p2, 1, 0 }
  0x10   : > { %p1536_p4 = por %p1526_p1, %p70_p0  ;;  %p1541_p6 = por %p251_p3, %p70_p0 }
  0x11   : > { %p258_p7 = scmp.lt.s32.totalorder %s1422_s12, 5  ;;  %s1424_s20 = smov [#allocation8]  }
  0x12   : > { %s1787_s17 = scalar_select %p1536_p4, 1, 0 }
  0x13   : > { %s1788_s18 = scalar_select %p1541_p6, 1, 0 }
  0x14   : > { %p1546_p8 = pnand %p1036_p5, %p258_p7  ;;  %s280_s21 = sshll.u32 %s1424_s20, 4  ;;  %s281_s21 = int_to_ptr.vmem [resolvable:$true] %s280_s21 }
  0x15   : > { %1789 = sst [smem:[#allocation15_spill]] %s1788_s18  ;;  %s40_s23 = sadd.s32 1, %s1414_s10 }
  0x16   : > { %s1790_s19 = scalar_select %p1546_p8, 1, 0 }
  0x17   : > { %p1162_p9 = pneg %p1546_p8  ;;  %s1792_s4 = sld [smem:[#allocation18_spill]] }
  0x19   : > { %p1554_p10 = pnand %p1162_p9, %p1526_p1 }
  0x1b   : > { %p1264_p12 = pneg %p1554_p10 }
  0x1d   : > { %s1262_s26 = scalar_lea.hbm %s1792_s4, 16 }
  0x1e   : > { %p1263_p11 = scmp.ne.s32.totalorder %s1792_s4, %s1262_s26  ;;  %p1269_p3 = scmp.lt.u32.totalorder %s1262_s26, %s1792_s4 }
  0x20   : > { %p1265_p13 = pnand %p1264_p12, %p1263_p11 }
  0x22   : > { %p1266_p0 = pneg %p1265_p13 }
  0x24   : > { %p1271_p5 = pnand %p1269_p3, %p1266_p0 }
  0x26   : > { %1274 = shalt.err (!%p1271_p5)
}
  0x27   : > { %s1275_s27 = scalar_lea.vmem %s281_s21, 16  ;;  %s1282_s24 = scalar_lea.vmem %s281_s21, 32 }
  0x28   : > { %p1276_p7 = scmp.ne.s32.totalorder %s281_s21, %s1275_s27  ;;  %p1283_p1 = scmp.lt.s32.totalorder %s281_s21, %s281_s21 }
  0x29   : > { %p1284_p4 = scmp.lt.s32.totalorder %s1282_s24, %s1275_s27 }
  0x2a   : > { %p1278_p9 = pnand %p1276_p7, %p1264_p12 }
  0x2b   : > { %p1285_p8 = por %p1284_p4, %p1283_p1 }
  0x2c   : > { %p1279_p6 = pneg %p1278_p9 }
  0x2e   : > { %p1286_p2 = pnand %p1285_p8, %p1279_p6 }
  0x30   : > { %1289 = shalt.err (!%p1286_p2)
}
  0x31   : > { %1165 = dma.hbm_to_vmem [thread:$0]  (!%p1554_p10), %s1792_s4, 16, %s281_s21, [#allocation9]  }
  0x32   : > { %p42_p11 = scmp.ge.s32.totalorder %s40_s23, 2  ;;  %s44_s27 = sadd.s32 1, %s1418_s11 }
  0x33   : > { %s57_s18 = sadd.s32 1, %s1402_s29  ;;  %p64_p1 = scmp.ne.s32.totalorder %s1402_s29, %s1398_s28 }
  0x34   : > { %s1814_s23 = smov (%p42_p11, %s40_s23), 0  ;;  %s1816_s27 = smov (!%p42_p11, %s44_s27), %s1418_s11 }
  0x35   : > { %1793 = sst [smem:[#allocation16_spill]] %s1814_s23  ;;  %p65_p2 = scmp.eq.s32.totalorder %s1422_s12, 0 }
  0x36   : > { %p1794_p4 = scmp.ne.s32.totalorder %s1786_s16, 0  ;;  %p46_p8 = scmp.ge.s32.totalorder %s1816_s27, 2 }
  0x37   : > { %p1175_p12 = scmp.lt.s32.totalorder %s1422_s12, 4  ;;  %p66_p13 = por %p65_p2, %p64_p1 }
  0x38   : > { %p1585_p6 = por %p1794_p4, %p64_p1  ;;  %s300_s21 = sand.u32 1, %s1402_s29  }
  0x39   : > { %s1818_s27 = smov (%p46_p8, %s1816_s27), 0  ;;  %s1039_s26 = sshll.u32 %s300_s21, 3 }
  0x3a   : > { %1796 = sst [smem:[#allocation17_spill]] %s1818_s27  ;;  %s52_s14 = ssub.s32 %s1418_s11, %s1818_s27 }
  0x3b   : > { %p55_p10 = scmp.eq.s32.totalorder %s52_s14, 0  ;;  %s1040_s20 = sshll.u32 %s1418_s11, 7 }
  0x3c   : > { %s1599_s16 = scalar_lea.hbm %s1767_s0, %s1040_s20  ;;  %s304_s13 = scalar_lea.vmem [#allocation5], %s1039_s26 }
  0x3d   : > { %s314_s4 = sshll.u32 %s304_s13, 4  ;;  %p1608_p0 = pnand %p1175_p12, %p66_p13  ;;  %s1604_s4 = int_to_ptr.vmem [resolvable:$true] %s314_s4 }
  0x3e   : > { %s1602_s23 = scalar_select %p55_p10, %s1402_s29, %s57_s18  }
  0x3f   : > { %s301_s14 = scalar_lea.sflag [#allocation6], %s300_s21  ;;  %s1290_s20 = scalar_lea.hbm %s1599_s16, 128 }
  0x40   : > { %p1291_p3 = scmp.ne.s32.totalorder %s1599_s16, %s1290_s20  ;;  %p1292_p5 = pneg %p1608_p0 }
  0x41   : > { %s1295_s24 = scalar_lea.hbm %s1767_s0, 256  ;;  %p1296_p11 = scmp.lt.u32.totalorder %s1599_s16, %s1767_s0 }
  0x42   : > { %p1293_p7 = pnand %p1292_p5, %p1291_p3  ;;  %p1297_p1 = scmp.lt.u32.totalorder %s1295_s24, %s1290_s20 }
  0x43   : > { %p1299_p4 = scmp.lt.u32.totalorder %s1290_s20, %s1599_s16 }
  0x44   : > { %p1294_p9 = pneg %p1293_p7  ;;  %p1298_p2 = por %p1297_p1, %p1296_p11 }
  0x46   : > { %p1300_p8 = por %p1299_p4, %p1298_p2 }
  0x48   : > { %p1301_p12 = pnand %p1300_p8, %p1294_p9 }
  0x4a   : > { %1304 = shalt.err (!%p1301_p12)
}
  0x4b   : > { %s1305_s21 = scalar_lea.vmem %s1604_s4, 128  ;;  %s1425_s18 = smov [#allocation5]  }
  0x4c   : > { %p1306_p13 = scmp.ne.s32.totalorder %s1604_s4, %s1305_s21  ;;  %s1310_s26 = sshll.u32 %s1425_s18, 4  ;;  %s1311_s26 = int_to_ptr.vmem [resolvable:$false] %s1310_s26 }
  0x4d   : > { %s1312_s25 = scalar_lea.vmem %s1311_s26, 256  ;;  %p1313_p7 = scmp.lt.s32.totalorder %s1604_s4, %s1311_s26 }
  0x4e   : > { %p1308_p10 = pnand %p1306_p13, %p1292_p5  ;;  %p1314_p11 = scmp.lt.s32.totalorder %s1312_s25, %s1305_s21 }
  0x50   : > { %p1309_p3 = pneg %p1308_p10  ;;  %p1315_p1 = por %p1314_p11, %p1313_p7 }
  0x52   : > { %p1316_p2 = pnand %p1315_p1, %p1309_p3 }
  0x54   : > { %1319 = shalt.err (!%p1316_p2)
}
  0x55   : > { %1169 = dma.hbm_to_vmem [thread:$0]  (!%p1608_p0), %s1599_s16, 128, %s1604_s4, %s301_s14  }
  0x56   : > { %p1798_p9 = scmp.ne.s32.totalorder %s1790_s19, 0 }
  0x57   : > { %s1640_s20 = sand.u32 (!%p1798_p9), 1, %s1398_s28   ;;  %p1799_p5 = scmp.ne.s32.totalorder (!%p1798_p9), %s1787_s17, 0 }
  0x58   : > { %323 = sbr.rel (%p1798_p9) target bundleno = 1938 (0x792), region = 52  ;;  %s1042_s24 = sshll.u32 (!%p1798_p9), %s1640_s20, 3 }
  0x59   : > { %s326_s13 = scalar_lea.sflag (!%p1798_p9), [#allocation6], %s1640_s20  ;;  %s329_s21 = scalar_lea.vmem (!%p1798_p9), [#allocation5], %s1042_s24 }
  0x5f   : > { %1381 = dma.done.wait (%p1799_p5), %s326_s13, 128  }
  0x60   : > { %1383 = vsyncadd (%p1799_p5), %s326_s13, 4294967168  ;;  %p1800_p4 = scmp.ne.s32.totalorder %s1785_s15, 0 }
  0x62   : > { %1385 = dma.done.wait (%p1800_p4), [#allocation9], 16  }
  0x63   : > { %1387 = vsyncadd (%p1800_p4), [#allocation9], 4294967280  ;;  %p369_p0 = scmp.eq.s32.totalorder %s1406_s30, 0  ;;  %s1653_s4 = scalar_lea.vmem [#allocation10], %s1042_s24 }
  0x64   : > { %vm375_vm0 = vcmask (%p369_p0), 269312   ;;  %v1426_v0 = vmov (%p369_p0), 0.0  }
  0x65   : > { %374 = sbr.rel (!%p369_p0) target bundleno = 108 (0x6c), region = 64  ;;  %376 = vst.msk [vmem:[#allocation2] sm:$0xff] (%p369_p0), %vm375_vm0, %v1426_v0  ;;  %377 = vst.msk [vmem:[#allocation2 + $0x8] sm:$0xff] (%p369_p0), %vm375_vm0, %v1426_v0 }
  0x6c PF: > { %p1046_p8 = scmp.ne.s32.totalorder %s1406_s30, 0 }
  0x6d   : > { %v381_v1 = vld [vmem:[%s329_s21] sm:$0xff] (!%p1046_p8)  ;;  %vm382_vm1 = vcmask (!%p1046_p8), 261120   ;;  %v415_v10 = vld [vmem:[%s1770_s3 + $0x10] sm:$0xff] (!%p1046_p8)  ;;  %v1427_v11 = vmov (!%p1046_p8), 0.0|0.0   ;;  %v416_v13 = vld [vmem:[%s1770_s3 + $0x18] sm:$0xff] (!%p1046_p8)  ;;  %vm1428_vm2 = vmmov (!%p1046_p8), 0  }
  0x6e   : > { %380 = sbr.rel (%p1046_p8) target bundleno = 1330 (0x532), region = 68  ;;  %v383_v2 = vsel (!%p1046_p8), %vm382_vm1, %v381_v1, 0.0  ;;  %v413_v8 = vld [vmem:[%s1770_s3] sm:$0xff] (!%p1046_p8)  ;;  %v414_v9 = vld [vmem:[%s1770_s3 + $0x8] sm:$0xff] (!%p1046_p8)  ;;  %1131 = vmatprep.subr.bf16.mxu0 (!%p1046_p8), %v1427_v11  ;;  %v1429_v14 = vmov (!%p1046_p8), 0.0   ;;  %v1135_v15 = vpack.c.bf16 (!%p1046_p8), %v416_v13, %v415_v10  ;;  %v513_v27 = vld [vmem:[%s1772_s5 + $0x10] sm:$0xff] (!%p1046_p8) }
  0x6f   : > { %384 = vadd.xlane.f32.xlu0 (!%p1046_p8), %v383_v2  ;;  %v1132_v12 = vpack.c.bf16 (!%p1046_p8), %v414_v9, %v413_v8  ;;  %1094 = vmatprep.mubr.msk.f32.mxu0 (!%p1046_p8), %vm1428_vm2, %v1429_v14  ;;  %733 = vst.msk [vmem:[%s1653_s4] sm:$0xff] (!%p1046_p8), %vm382_vm1, %v1429_v14  ;;  %v1047_v20 = vld [vmem:[%s1768_s1] ss:$0 sm:$0xff] (!%p1046_p8)  ;;  %v512_v26 = vld [vmem:[%s1772_s5 + $0x8] sm:$0xff] (!%p1046_p8)  ;;  %v514_v29 = vld [vmem:[%s1772_s5 + $0x18] sm:$0xff] (!%p1046_p8)  ;;  %s1430_s25 = smov (!%p1046_p8), 64  }
  0x70   : > { %v1048_v22 = vld [vmem:[%s1769_s2] ss:$0 sm:$0xff] (!%p1046_p8)  ;;  %v1141_v30 = vpack.c.bf16 (!%p1046_p8), %v514_v29, %v513_v27  ;;  %v1049_v31 = vld [vmem:[#allocation8] ss:$0 sm:$0xff] (!%p1046_p8)  ;;  %s1431_s24 = smov (!%p1046_p8), 96   ;;  %vm729_vm3 = vcmask (!%p1046_p8), 130048  }
  0x71   : > { %1133 = vmatpush3.bf16.msra.mxu0 (!%p1046_p8), %v1132_v12  ;;  %v511_v25 = vld [vmem:[%s1772_s5] sm:$0xff] (!%p1046_p8)  ;;  %vm640_vm4 = vcmask (!%p1046_p8), 64512   ;;  %v607_v58 = vld [vmem:[#allocation2 + $0x8] sm:$0xff] (!%p1046_p8)  ;;  %vm724_vm5 = vcmask (!%p1046_p8), 269312  }
  0x72   : > { %1134 = vmatprep.subr.bf16.mxu0 (!%p1046_p8), %v1427_v11  ;;  %v1137_v28 = vpack.c.bf16 (!%p1046_p8), %v512_v26, %v511_v25  ;;  %v606_v59 = vld [vmem:[#allocation2] sm:$0xff] (!%p1046_p8) }
  0x74   : > { %1138 = vmatprep.subr.bf16.mxu1 (!%p1046_p8), %v1137_v28 }
  0x75   : > { %1136 = vmatpush3.bf16.msra.mxu0 %v1135_v15  ;;  %1140 = vmatpush3.bf16.msra.mxu1 %v1137_v28 }
  0x76   : > { %1142 = vmatprep.subr.bf16.mxu1 %v1141_v30 }
  0x79   : > { %1144 = vmatpush3.bf16.msra.mxu1 %v1141_v30 }
  0xfc   : > { %v385_v3 = vpop.xlane.xlu0 %384 }
  0xfd   : > { %v387_v4 = vmul.f32 0.03125, %v385_v3 }
  0xff   : > { %v388_v5 = vsub.f32 %v381_v1, %v387_v4 }
 0x101   : > { %v389_v6 = vmul.f32 %v388_v5, %v388_v5 }
 0x103   : > { %v390_v7 = vsel %vm382_vm1, %v389_v6, 0.0 }
 0x104   : > { %391 = vadd.xlane.f32.xlu0 %v390_v7 }
 0x191   : > { %v392_v16 = vpop.xlane.xlu0 %391 }
 0x192   : > { %v393_v17 = vmul.f32 0.03125, %v392_v16 }
 0x194   : > { %v394_v18 = vadd.f32 1e-05, %v393_v17 }
 0x196   : > { %1253 = vrsqrt.f32 %v394_v18 }
 0x1a0   : > { %v1254_v19 = vpop.eup %1253 }
 0x1a1   : > { %v396_v21 = vmul.f32 %v1254_v19, %v388_v5 }
 0x1a3   : > { %v404_v23 = vmul.f32 %v1047_v20, %v396_v21 }
 0x1a5   : > { %v412_v24 = vadd.f32 %v1048_v22, %v404_v23 }
 0x1a7   : > { %1095 = vmatmul.mubr.msk.f32.vlgmr.msra.gmra.mrb[0].mxu0 %vm382_vm1, %v412_v24 }
 0x27a   : > { %v493_v32 = vpop.f32.mrb[0].mxu0 }
 0x27b   : > { %v494_v33 = vadd.f32 %v1049_v31, %v493_v32  ;;  %v1096_v34 = vpop.f32.mrb[1].mxu0 }
 0x27d   : > { %602 = vrot.lane.b32.xlu0 %v494_v33, %s1430_s25  ;;  %498 = vrot.lane.b32.xlu1 %v494_v33, %s1431_s24  ;;  %v501_v40 = vmul.f32 %v494_v33, %v494_v33 }
 0x27e   : > { %1105 = vmatprep.mubr.msk.f32.mxu1 %vm382_vm1, %v494_v33 }
 0x27f   : > { %v503_v41 = vsel %vm382_vm1, %v501_v40, 0.0 }
 0x2ef   : > { %v603_v35 = vpop.permute.xlu0 %602  ;;  %v499_v36 = vpop.permute.xlu1 %498 }
 0x2f0   : > { %732 = vst.msk [vmem:[#allocation4] sm:$0xff] %vm382_vm1, %v603_v35  ;;  %v502_v37 = vmul.f32 %v499_v36, %v499_v36  ;;  %1106 = vmatmul.mubr.msk.f32.vlgmr.msra.gmra.mrb[0].mxu1 %vm382_vm1, %v499_v36  ;;  %v605_v38 = vsel %vm382_vm1, %v603_v35, 1.0 }
 0x2f1   : > { %1108 = vmatprep.subr.mxu0 %v605_v38 }
 0x2f2   : > { %1109 = vmatpush3.msra.mxu0 %v605_v38  ;;  %v506_v39 = vsel %vm382_vm1, %v502_v37, 0.0 }
 0x2f3   : > { %507 = vadd.xlane.f32.xlu1 %v506_v39 }
 0x2f7   : > { %504 = vadd.xlane.f32.xlu1 %v503_v41 }
 0x380   : > { %v508_v42 = vpop.xlane.xlu1 %507 }
 0x381   : > { %v510_v44 = vmul.f32 0.5, %v508_v42 }
 0x384   : > { %v505_v43 = vpop.xlane.xlu1 %504 }
 0x385   : > { %v509_v45 = vmul.f32 0.5, %v505_v43 }
 0x3c3   : > { %v1107_v46 = vpop.f32.mrb[0].mxu1 }
 0x3c4   : > { %v595_v47 = vsub.f32 %v1107_v46, %v510_v44  ;;  %v585_v48 = vpop.f32.mrb[1].mxu1 }
 0x3c5   : > { %v594_v49 = vsub.f32 %v585_v48, %v509_v45 }
 0x3c6   : > { %v598_v50 = vmul.f32 1.442695, %v595_v47 }
 0x3c7   : > { %v596_v51 = vmul.f32 1.442695, %v594_v49 }
 0x3c8   : > { %1255 = vpow2.f32 %v598_v50 }
 0x3c9   : > { %1257 = vpow2.f32 %v596_v51 }
 0x3d2   : > { %v1256_v52 = vpop.eup %1255 }
 0x3d3   : > { %v1258_v53 = vpop.eup %1257  ;;  %v601_v54 = vmul.f32 0.25, %v1256_v52 }
 0x3d4   : > { %v600_v55 = vmul.f32 0.25, %v1258_v53 }
 0x3d5   : > { %608 = vxpose.xlu0.b32.start.end [1/1] (short) (narrow) %v601_v54, 16 }
 0x3d6   : > { %730 = vst.msk [vmem:[#allocation3] sm:$0xff] %vm729_vm3, %v600_v55 }
 0x455   : > { %v624_v56 = vpop.trf.xlu0 }
 0x456   : > { %1110 = vmatprep.mubr.msk.f32.mxu0 %vm640_vm4, %v624_v56 }
 0x459   : > { %v625_v57 = vpop.trf.xlu0 }
 0x45a   : > { %1111 = vmatmul.mubr.msk.f32.vlgmr.msra.gmra.mrb[2].mxu0 %vm640_vm4, %v625_v57 }
 0x52d   : > { %v1112_v60 = vpop.f32.mrb[2].mxu0 }
 0x52e   : > { %v723_v61 = vadd.f32 %v1112_v60, %v607_v58  ;;  %v713_v62 = vpop.f32.mrb[3].mxu0 }
 0x52f   : > { %v722_v63 = vadd.f32 %v713_v62, %v606_v59 }
 0x530   : > { %726 = vst.msk [vmem:[#allocation2 + $0x8] sm:$0xff] %vm724_vm5, %v723_v61 }
 0x531   : > { %725 = vst.msk [vmem:[#allocation2] sm:$0xff] %vm724_vm5, %v722_v63 }
 0x532 PF: > { %p1055_p12 = scmp.ne.s32.totalorder %s1406_s30, 1 }
 0x533   : > { %v1432_v2 = vmov (!%p1055_p12), 0.0|0.0   ;;  %vm1433_vm6 = vmmov (!%p1055_p12), 0   ;;  %v1434_v4 = vmov (!%p1055_p12), 0.0   ;;  %v740_v5 = vld [vmem:[#allocation3] sm:$0xff] (!%p1055_p12)  ;;  %vm745_vm7 = vcmask (!%p1055_p12), 130048   ;;  %v827_v10 = vld [vmem:[%s1773_s6] sm:$0xff] (!%p1055_p12) }
 0x534   : > { %737 = sbr.rel (%p1055_p12) target bundleno = 1914 (0x77a), region = 72  ;;  %1145 = vmatprep.subr.bf16.mxu0 (!%p1055_p12), %v1432_v2  ;;  %1117 = vmatprep.mubr.msk.f32.mxu0 (!%p1055_p12), %vm1433_vm6, %v1434_v4  ;;  %v1435_v6 = vmov (!%p1055_p12), 32   ;;  %v828_v11 = vld [vmem:[%s1773_s6 + $0x8] sm:$0xff] (!%p1055_p12)  ;;  %v829_v12 = vld [vmem:[%s1773_s6 + $0x10] sm:$0xff] (!%p1055_p12)  ;;  %v830_v14 = vld [vmem:[%s1773_s6 + $0x18] sm:$0xff] (!%p1055_p12)  ;;  %vm838_vm8 = vcmask (!%p1055_p12), 261120  }
 0x535   : > { %1148 = vmatprep.subr.bf16.mxu1 (!%p1055_p12), %v1432_v2  ;;  %1128 = vmatprep.mubr.msk.f32.mxu1 (!%p1055_p12), %vm1433_vm6, %v1434_v4  ;;  %v1149_v13 = vpack.c.bf16 (!%p1055_p12), %v828_v11, %v827_v10  ;;  %v1152_v15 = vpack.c.bf16 (!%p1055_p12), %v830_v14, %v829_v12  ;;  %v1057_v19 = vld [vmem:[%s1774_s7] ss:$0 sm:$0xff] (!%p1055_p12)  ;;  %v742_v20 = vld [vmem:[#allocation4] sm:$0xff] (!%p1055_p12) }
 0x536   : > { %1259 = vset.pattern.permute.xlu0 (!%p1055_p12), %v1435_v6 }
 0x537   : > { %v744_v1 = vld [vmem:[#allocation2 + $0x8] sm:$0xff] (!%p1055_p12)  ;;  %1150 = vmatpush3.bf16.msra.mxu1 (!%p1055_p12), %v1149_v13 }
 0x538   : > { %v743_v0 = vld [vmem:[#allocation2] sm:$0xff] (!%p1055_p12)  ;;  %1151 = vmatprep.subr.bf16.mxu1 (!%p1055_p12), %v1432_v2 }
 0x539   : > { %v1146_v3 = vpack.c.bf16 (!%p1055_p12), %v744_v1, %v743_v0 }
 0x53b   : > { %1147 = vmatpush3.bf16.msra.mxu0 %v1146_v3  ;;  %1153 = vmatpush3.bf16.msra.mxu1 %v1152_v15 }
 0x53e   : > { %1118 = vmatmul.mubr.msk.f32.vlgmr.msra.gmra.mrb[0].mxu0 %vm745_vm7, %v740_v5 }
 0x611   : > { %v815_v7 = vpop.f32.mrb[0].mxu0 }
 0x612   : > { %v1119_v8 = vpop.f32.mrb[1].mxu0  ;;  %v819_v9 = vadd.f32 1e-08, %v815_v7 }
 0x614   : > { %822 = vperm.xlu0 %1259, %v819_v9  }
 0x693   : > { %v823_v16 = vpop.permute.xlu0 %822 }
 0x694   : > { %1260 = vrcp.f32 %v823_v16 }
 0x69e   : > { %v1261_v17 = vpop.eup %1260 }
 0x69f   : > { %v826_v18 = vmul.f32 %v1261_v17, %v815_v7 }
 0x6a1   : > { %1129 = vmatmul.mubr.msk.f32.vlgmr.msra.gmra.mrb[0].mxu1 %vm838_vm8, %v826_v18 }
 0x774   : > { %v908_v21 = vpop.f32.mrb[0].mxu1 }
 0x775   : > { %v909_v22 = vadd.f32 %v1057_v19, %v908_v21  ;;  %v1130_v23 = vpop.f32.mrb[1].mxu1 }
 0x777   : > { %v912_v24 = vadd.f32 %v909_v22, %v742_v20 }
 0x779   : > { %913 = vst.msk [vmem:[%s1653_s4] sm:$0xff] %vm838_vm8, %v912_v24 }
 0x77a PF: > { %s1060_s26 = sshll.u32 %s1410_s9, 7  ;;  %s930_s13 = sshll.u32 %s1653_s4, 4  ;;  %s931_s13 = int_to_ptr.vmem [resolvable:$true] %s930_s13 }
 0x77b   : > { %s1718_s30 = scalar_lea.hbm %s1775_s8, %s1060_s26  ;;  %s915_s21 = scalar_lea.sflag [#allocation7], %s1640_s20 }
 0x77c   : > { %s1320_s15 = scalar_lea.vmem %s931_s13, 128  ;;  %s1436_s17 = smov [#allocation10]  }
 0x77d   : > { %p1321_p13 = scmp.ne.s32.totalorder %s931_s13, %s1320_s15  ;;  %s1324_s19 = sshll.u32 %s1436_s17, 4  ;;  %s1325_s19 = int_to_ptr.vmem [resolvable:$false] %s1324_s19 }
 0x77e   : > { %s1326_s27 = scalar_lea.vmem %s1325_s19, 256  ;;  %p1327_p7 = scmp.lt.s32.totalorder %s931_s13, %s1325_s19 }
 0x77f   : > { %p1322_p10 = pnand %p1321_p13, %p1585_p6  ;;  %p1328_p11 = scmp.lt.s32.totalorder %s1326_s27, %s1320_s15 }
 0x781   : > { %p1323_p3 = pneg %p1322_p10  ;;  %p1329_p1 = por %p1328_p11, %p1327_p7 }
 0x783   : > { %p1330_p2 = pnand %p1329_p1, %p1323_p3 }
 0x785   : > { %1333 = shalt.err (!%p1330_p2)
}
 0x786   : > { %s1334_s9 = scalar_lea.hbm %s1718_s30, 128  ;;  %s1338_s16 = scalar_lea.hbm %s1775_s8, 256 }
 0x787   : > { %p1335_p9 = scmp.ne.s32.totalorder %s1718_s30, %s1334_s9  ;;  %p1339_p0 = scmp.lt.u32.totalorder %s1718_s30, %s1775_s8 }
 0x788   : > { %p1340_p8 = scmp.lt.u32.totalorder %s1338_s16, %s1334_s9  ;;  %p1342_p13 = scmp.lt.u32.totalorder %s1334_s9, %s1718_s30 }
 0x789   : > { %p1336_p5 = pnand %p1335_p9, %p1585_p6 }
 0x78a   : > { %p1341_p12 = por %p1340_p8, %p1339_p0 }
 0x78b   : > { %p1337_p4 = pneg %p1336_p5 }
 0x78c   : > { %p1343_p10 = por %p1342_p13, %p1341_p12 }
 0x78e   : > { %p1344_p3 = pnand %p1343_p10, %p1337_p4 }
 0x790   : > { %1347 = shalt.err (!%p1344_p3)
}
 0x791   : > { %1160 = dma.vmem_to_hbm [thread:$0]  (%p1585_p6), %s931_s13, 128, %s1718_s30, %s915_s21  }
 0x792 PF: > { %s1801_s26 = sld [smem:[#allocation14_spill]]  ;;  %s1802_s25 = sld [smem:[#allocation15_spill]] }
 0x793   : > { %p1177_p7 = scmp.ge.s32.totalorder %s1422_s12, 2 }
 0x798   : > { %s942_s24 = sand.u32 1, %s1801_s26   ;;  %p1803_p11 = scmp.ne.s32.totalorder %s1802_s25, 0 }
 0x799   : > { %s943_s15 = scalar_lea.sflag [#allocation7], %s942_s24 }
 0x79a   : > { %p1171_p1 = pnand %p1177_p7, %p1803_p11 }
 0x79c   : > { %1389 = dma.done.wait (!%p1171_p1), %s943_s15, 128  }
 0x79d   : > { %1391 = vsyncadd (!%p1171_p1), %s943_s15, 4294967168  ;;  %s25_s12 = sadd.s32 1, %s1422_s12   ;;  %s1804_s22 = sld [smem:[#allocation16_spill]] }
 0x79e   : > { %p22_p2 = scmp.ge.s32.totalorder %s25_s12, 6   ;;  %s1805_s13 = sld [smem:[#allocation17_spill]] }
 0x79f   : > { %s1806_s27 = smov %s1398_s28  ;;  %s1807_s28 = smov %s1402_s29 }
 0x7a0   : > { %s1808_s29 = smov %s1602_s23  ;;  %s1809_s30 = smov %s1414_s10 }
 0x7a1   : > { %s1810_s9 = smov %s1418_s11  ;;  %24 = sbr.rel (!%p22_p2) target bundleno = 10 (0xa), region = 117 }
 0x7a3   : > { %s1811_s10 = smov %s1804_s22 }
 0x7a4   : > { %s1812_s11 = smov %s1805_s13 }
 0x7a8   :  { %948 = vsyncpa [#allocation6], 1 }
 0x7a9   :  { %950 = vsyncpa [#allocation6 + $0x1], 1 }
 0x7aa   :  { %951 = vsyncpa [#allocation9], 1 }
 0x7ab   :  { %952 = vsyncpa [#allocation7], 1 }
 0x7ac   :  { %954 = vsyncpa [#allocation7 + $0x1], 1 }

</bundles_post_ra>
